<compile_context>
chip_gen: v6e
topology: v6e:2x2x1
jax: 0.10.0
libtpu: 0.0.40
codegen_flags: <defaults>
</compile_context>

<pallas_src>
import functools

import jax
import jax.numpy as jnp
from jax.experimental import pallas as pl
from jax.experimental.pallas import tpu as pltpu


def _round_up(x, m):
    return (x + m - 1) // m * m


def _largest_divisor_tile(n_pad, cap):
    cand = cap
    while cand > 128:
        if n_pad % cand == 0:
            return cand
        cand //= 2
    return 128


def _pick_tiles(n_pad):
    # Row tile: prefer an even number (>= 2) of row tiles so the "parallel"
    # row axis splits evenly over v7x's two TensorCores; else largest divisor.
    tm = None
    for cand in (512, 256, 128):
        if n_pad % cand == 0 and (n_pad // cand) >= 2 and (n_pad // cand) % 2 == 0:
            tm = cand
            break
    if tm is None:
        for cand in (512, 256, 128):
            if n_pad % cand == 0:
                tm = cand
                break
    # K (reduction) tile: as large as divides — amortizes per-grid-step
    # overhead and accumulator traffic.
    tk = 128
    for cand in (2048, 1024, 512, 256, 128):
        if n_pad % cand == 0:
            tk = cand
            break
    return tm, tk


# ---------------------------------------------------------------------------
# Kernel 0: one-pass adjacency normalization + bf16 cast
#   A_hat = D^-1/2 * A * D^-1/2   (single f32 read, single bf16 write)
# ---------------------------------------------------------------------------
def _normalize_kernel(a_ref, dcol_ref, drow_ref, o_ref):
    o_ref[...] = (dcol_ref[...] * a_ref[...] * drow_ref[...]).astype(o_ref.dtype)


def normalize_adjacency(a_pad, dinv):
    n_pad = a_pad.shape[0]
    t = _largest_divisor_tile(n_pad, 512)
    dcol = dinv.reshape(n_pad, 1)
    drow = dinv.reshape(1, n_pad)
    return pl.pallas_call(
        _normalize_kernel,
        out_shape=jax.ShapeDtypeStruct((n_pad, n_pad), jnp.bfloat16),
        grid_spec=pltpu.PrefetchScalarGridSpec(
            num_scalar_prefetch=0,
            grid=(n_pad // t, n_pad // t),
            in_specs=[
                pl.BlockSpec((t, t), lambda i, j: (i, j)),
                pl.BlockSpec((t, 1), lambda i, j: (i, 0)),
                pl.BlockSpec((1, t), lambda i, j: (0, j)),
            ],
            out_specs=pl.BlockSpec((t, t), lambda i, j: (i, j)),
        ),
        compiler_params=pltpu.CompilerParams(
            dimension_semantics=("parallel", "parallel")
        ),
    )(a_pad, dcol, drow)


# ---------------------------------------------------------------------------
# Kernel 1: feature transform  XW = X @ W   (tiny; tiled over rows only)
# ---------------------------------------------------------------------------
def _linear_kernel(x_ref, w_ref, o_ref):
    o_ref[...] = jnp.dot(
        x_ref[...], w_ref[...], preferred_element_type=jnp.float32
    ).astype(o_ref.dtype)


def linear(x, w, *, tm, out_dtype):
    n, kin = x.shape
    kout = w.shape[1]
    return pl.pallas_call(
        _linear_kernel,
        out_shape=jax.ShapeDtypeStruct((n, kout), out_dtype),
        grid_spec=pltpu.PrefetchScalarGridSpec(
            num_scalar_prefetch=0,
            grid=(n // tm,),
            in_specs=[
                pl.BlockSpec((tm, kin), lambda i: (i, 0)),
                pl.BlockSpec((kin, kout), lambda i: (0, 0)),
            ],
            out_specs=pl.BlockSpec((tm, kout), lambda i: (i, 0)),
        ),
        compiler_params=pltpu.CompilerParams(
            dimension_semantics=("parallel",)
        ),
    )(x, w)


# ---------------------------------------------------------------------------
# Kernel 2: propagation  OUT = [relu](A_hat @ H + b)
#   grid = (row tiles, K tiles); H is VMEM-resident (full slab, constant
#   index_map) and sliced per K tile; f32 accumulator only when the output
#   dtype is not f32 (otherwise accumulate straight into the resident o_ref).
# ---------------------------------------------------------------------------
def _propagate_kernel(a_ref, h_ref, b_ref, o_ref, *scratch,
                      tk, apply_relu, h_resident):
    acc_ref = scratch[0] if scratch else o_ref
    k = pl.program_id(1)

    @pl.when(k == 0)
    def _init():
        acc_ref[...] = jnp.zeros_like(acc_ref)

    if h_resident:
        start = pl.multiple_of(k * tk, tk)
        h_blk = h_ref[pl.ds(start, tk), :]
    else:
        h_blk = h_ref[...]

    acc_ref[...] += jnp.dot(
        a_ref[...], h_blk, preferred_element_type=jnp.float32
    )

    @pl.when(k == pl.num_programs(1) - 1)
    def _finalize():
        y = acc_ref[...] + b_ref[...]
        if apply_relu:
            y = jnp.maximum(y, 0.0)
        o_ref[...] = y.astype(o_ref.dtype)


def propagate(a, h, b, *, tm, tk, apply_relu, out_dtype):
    n = a.shape[0]
    f = h.shape[1]
    out_itemsize = jnp.dtype(out_dtype).itemsize
    use_scratch = jnp.dtype(out_dtype) != jnp.dtype(jnp.float32)

    # Keep the full H slab resident in VMEM unless its (double-buffered)
    # footprint would blow the per-core budget (v7x: 64 MiB physical).
    h_slab_bytes = 2 * h.size * h.dtype.itemsize
    h_resident = h_slab_bytes <= (24 << 20)

    if h_resident:
        h_spec = pl.BlockSpec((n, f), lambda i, k: (0, 0))
        h_vmem = h_slab_bytes
    else:
        h_spec = pl.BlockSpec((tk, f), lambda i, k: (k, 0))
        h_vmem = 2 * tk * f * h.dtype.itemsize

    scratch_shapes = [pltpu.VMEM((tm, f), jnp.float32)] if use_scratch else []

    vmem_est = (
        2 * tm * tk * a.dtype.itemsize          # A tile, double-buffered
        + h_vmem                                # H
        + 2 * f * 4                             # bias
        + 2 * tm * f * out_itemsize             # output tile
        + (tm * f * 4 if use_scratch else 0)    # accumulator
    )
    vmem_limit = min(max(vmem_est + (8 << 20), 32 << 20), 64 << 20)

    kernel = functools.partial(
        _propagate_kernel, tk=tk, apply_relu=apply_relu, h_resident=h_resident
    )
    return pl.pallas_call(
        kernel,
        out_shape=jax.ShapeDtypeStruct((n, f), out_dtype),
        grid_spec=pltpu.PrefetchScalarGridSpec(
            num_scalar_prefetch=0,
            grid=(n // tm, n // tk),
            in_specs=[
                pl.BlockSpec((tm, tk), lambda i, k: (i, k)),
                h_spec,
                pl.BlockSpec((1, f), lambda i, k: (0, 0)),
            ],
            out_specs=pl.BlockSpec((tm, f), lambda i, k: (i, 0)),
            scratch_shapes=scratch_shapes,
        ),
        compiler_params=pltpu.CompilerParams(
            dimension_semantics=("parallel", "arbitrary"),
            vmem_limit_bytes=int(vmem_limit),
        ),
    )(a, h, b)


# ---------------------------------------------------------------------------
# Graph preprocessing (run ONCE per static graph, outside the inference path):
# padded dense A_hat in bf16, built directly at (n_pad, n_pad).
# ---------------------------------------------------------------------------
@functools.partial(jax.jit, static_argnames=("num_nodes",))
def prepare_adjacency(edge_index, edge_weight, *, num_nodes):
    n_pad = _round_up(num_nodes, 128)
    src = edge_index[0]
    tgt = edge_index[1]
    is_self = src == tgt

    # Off-diagonal edges: A[target, source] = w
    w_off = jnp.where(is_self, 0.0, edge_weight)
    a = jnp.zeros((n_pad, n_pad), jnp.float32).at[tgt, src].add(w_off)

    # add_remaining_self_loops: keep an existing self-loop's weight, else 1.0.
    diag = jnp.ones((num_nodes + 1,), jnp.float32)
    diag_idx = jnp.where(is_self, src, num_nodes)  # non-self edges -> trash row
    diag = diag.at[diag_idx].set(jnp.where(is_self, edge_weight, 1.0))
    diag = diag[:num_nodes]
    idx = jnp.arange(num_nodes)
    a = a.at[idx, idx].add(diag)

    deg = a.sum(axis=1)                              # padded rows -> 0
    dinv = jnp.where(deg > 0, jax.lax.rsqrt(jnp.maximum(deg, 1e-30)), 0.0)

    # One-pass D^-1/2 A D^-1/2 + bf16 cast (Pallas).
    return normalize_adjacency(a, dinv)


# ---------------------------------------------------------------------------
# Forward wrapper: padding, two GCNConv layers + ReLU
# ---------------------------------------------------------------------------
@functools.partial(jax.jit, static_argnames=("num_nodes",))
def gcn_forward(a_hat_pad, x, w1, b1, w2, b2, *, num_nodes):
    n_pad = a_hat_pad.shape[0]
    f_in = x.shape[1]
    hidden = w1.shape[1]
    n_class = w2.shape[1]

    f_in_p = _round_up(f_in, 128)
    hid_p = _round_up(hidden, 128)
    cls_p = _round_up(n_class, 128)

    # Tiny pads (feature-sized, not N^2).
    x_p = jnp.zeros((n_pad, f_in_p), jnp.float32).at[:num_nodes, :f_in].set(x)
    w1_p = jnp.zeros((f_in_p, hid_p), jnp.float32).at[:f_in, :hidden].set(w1)
    b1_p = jnp.zeros((1, hid_p), jnp.float32).at[:, :hidden].set(
        b1.reshape(1, -1)
    )
    w2_p = jnp.zeros((hid_p, cls_p), jnp.bfloat16).at[:hidden, :n_class].set(
        w2.astype(jnp.bfloat16)
    )
    b2_p = jnp.zeros((1, cls_p), jnp.float32).at[:, :n_class].set(
        b2.reshape(1, -1)
    )

    tm, tk = _pick_tiles(n_pad)
    tlin = _largest_divisor_tile(n_pad, 1024)

    # Layer 1: H = relu(A_hat @ (X @ W1) + b1)
    xw1 = linear(x_p, w1_p, tm=tlin, out_dtype=jnp.bfloat16)
    h = propagate(
        a_hat_pad, xw1, b1_p, tm=tm, tk=tk, apply_relu=True,
        out_dtype=jnp.bfloat16,
    )

    # Layer 2: OUT = A_hat @ (H @ W2) + b2
    hw2 = linear(h, w2_p, tm=tlin, out_dtype=jnp.bfloat16)
    out_p = propagate(
        a_hat_pad, hw2, b2_p, tm=tm, tk=tk, apply_relu=False,
        out_dtype=jnp.float32,
    )

    return out_p[:num_nodes, :n_class]


# ---------------------------------------------------------------------------
# Pure-JAX f32 reference (same gcn_norm / add_remaining_self_loops semantics)
# ---------------------------------------------------------------------------
def _reference_forward(edge_index, edge_weight, num_nodes, x, w1, b1, w2, b2):
    src, tgt = edge_index[0], edge_index[1]
    is_self = src == tgt
    w_off = jnp.where(is_self, 0.0, edge_weight)
    a = jnp.zeros((num_nodes, num_nodes), jnp.float32).at[tgt, src].add(w_off)
    diag = jnp.ones((num_nodes + 1,), jnp.float32)
    diag = diag.at[jnp.where(is_self, src, num_nodes)].set(
        jnp.where(is_self, edge_weight, 1.0)
    )
    idx = jnp.arange(num_nodes)
    a = a.at[idx, idx].add(diag[:num_nodes])
    deg = a.sum(axis=1)
    dinv = jnp.where(deg > 0, 1.0 / jnp.sqrt(deg), 0.0)
    a_hat = dinv[:, None] * a * dinv[None, :]
    h = jnp.maximum(a_hat @ (x @ w1) + b1, 0.0)
    return a_hat @ (h @ w2) + b2


if __name__ == "__main__":
    key = jax.random.PRNGKey(0)
    n_nodes = 16
    n_class = 4
    hidden = 32
    n_edges = 32

    keys = jax.random.split(key, 8)

    # Graph data (data.x, data.edge_index, data.edge_attr)
    x = jax.random.normal(keys[0], (n_nodes, n_class), dtype=jnp.float32)
    edge_index = jnp.stack(
        [
            jax.random.randint(keys[1], (n_edges,), 0, n_nodes),
            jax.random.randint(keys[2], (n_edges,), 0, n_nodes),
        ],
        axis=0,
    )
    edge_attr = jax.random.uniform(
        keys[3], (n_edges,), minval=0.5, maxval=1.5, dtype=jnp.float32
    )

    # Deterministic parameter init (Glorot-uniform-like weights, small biases)
    lim1 = (6.0 / (n_class + hidden)) ** 0.5
    w1 = jax.random.uniform(
        keys[4], (n_class, hidden), minval=-lim1, maxval=lim1, dtype=jnp.float32
    )
    b1 = 0.1 * jax.random.normal(keys[5], (1, hidden), dtype=jnp.float32)
    lim2 = (6.0 / (hidden + n_class)) ** 0.5
    w2 = jax.random.uniform(
        keys[6], (hidden, n_class), minval=-lim2, maxval=lim2, dtype=jnp.float32
    )
    b2 = 0.1 * jax.random.normal(keys[7], (1, n_class), dtype=jnp.float32)

    # Graph preprocessing (once per static graph)
    a_hat_pad = prepare_adjacency(edge_index, edge_attr, num_nodes=n_nodes)

    # Forward pass
    out = gcn_forward(a_hat_pad, x, w1, b1, w2, b2, num_nodes=n_nodes)
    jax.block_until_ready(out)

    # Sanity check vs. plain-JAX f32 reference (bf16 A_hat/H -> loose tol)
    out_ref = _reference_forward(
        edge_index, edge_attr, n_nodes, x, w1, b1, w2, b2
    )
    assert out.shape == (n_nodes, n_class)
    assert jnp.allclose(out, out_ref, atol=5e-2, rtol=5e-2), (
        float(jnp.max(jnp.abs(out - out_ref)))
    )

    print("KERNEL_OK")
</pallas_src>

<mosaic_0001>
module attributes {stable_mosaic.version = 11 : i64} {
  func.func private @main(%arg0: i32) attributes {dimension_semantics = [#tpu.dimension_semantics<core_parallel>], iteration_bounds = array<i64: 2>, tpu.core_type = #tpu.core_type<sc_scalar_subcore>, window_params = []} {
    return
  }
}

module attributes {stable_mosaic.version = 11 : i64} {
  func.func private @main(%arg0: i32) attributes {dimension_semantics = [#tpu.dimension_semantics<core_parallel>], iteration_bounds = array<i64: 2>, tpu.core_type = #tpu.core_type<sc_scalar_subcore>, window_params = []} {
    return
  }
}

module attributes {stable_mosaic.version = 11 : i64} {
  func.func @_normalize_kernel(%arg0: i32, %arg1: i32, %arg2: memref<128x128xf32, #tpu.memory_space<vmem>>, %arg3: memref<128x1xf32, #tpu.memory_space<vmem>>, %arg4: memref<1x128xf32, #tpu.memory_space<vmem>>, %arg5: memref<128x128xbf16, #tpu.memory_space<vmem>>) attributes {dimension_semantics = [#tpu.dimension_semantics<parallel>, #tpu.dimension_semantics<parallel>], iteration_bounds = array<i64: 1, 1>, scalar_prefetch = 0 : i64, scratch_operands = 0 : i64, tpu.core_type = #tpu.core_type<tc>, window_params = [{transform_indices = @transform_0, window_bounds = array<i64: 128, 128>}, {transform_indices = @transform_1, window_bounds = array<i64: 128, 1>}, {transform_indices = @transform_2, window_bounds = array<i64: 1, 128>}, {transform_indices = @transform_3, window_bounds = array<i64: 128, 128>}]} {
    %c0 = arith.constant 0 : index
    %c0_0 = arith.constant 0 : index
    %0 = vector.load %arg3[%c0, %c0_0] : memref<128x1xf32, #tpu.memory_space<vmem>>, vector<128x1xf32>
    %c0_1 = arith.constant 0 : index
    %c0_2 = arith.constant 0 : index
    %1 = vector.load %arg2[%c0_1, %c0_2] : memref<128x128xf32, #tpu.memory_space<vmem>>, vector<128x128xf32>
    %2 = vector.broadcast %0 : vector<128x1xf32> to vector<128x128xf32>
    %3 = arith.mulf %2, %1 : vector<128x128xf32>
    %c0_3 = arith.constant 0 : index
    %c0_4 = arith.constant 0 : index
    %4 = vector.load %arg4[%c0_3, %c0_4] : memref<1x128xf32, #tpu.memory_space<vmem>>, vector<1x128xf32>
    %5 = vector.broadcast %4 : vector<1x128xf32> to vector<128x128xf32>
    %6 = arith.mulf %3, %5 : vector<128x128xf32>
    %7 = arith.truncf %6 : vector<128x128xf32> to vector<128x128xbf16>
    %c0_5 = arith.constant 0 : index
    %c0_6 = arith.constant 0 : index
    %8 = vector.load %arg5[%c0_5, %c0_6] : memref<128x128xbf16, #tpu.memory_space<vmem>>, vector<128x128xbf16>
    tpu.vector_store %arg5[%c0_5, %c0_6], %7 {strides = array<i32>} : memref<128x128xbf16, #tpu.memory_space<vmem>>, vector<128x128xbf16>,
    return
  }
  func.func @transform_0(%arg0: i32, %arg1: i32) -> (i32, i32) {
    %c0_i32 = arith.constant 0 : i32
    return %arg0, %arg1 : i32, i32
  }
  func.func @transform_1(%arg0: i32, %arg1: i32) -> (i32, i32) {
    %c0_i32 = arith.constant 0 : i32
    %c0_i32_0 = arith.constant 0 : i32
    return %arg0, %c0_i32 : i32, i32
  }
  func.func @transform_2(%arg0: i32, %arg1: i32) -> (i32, i32) {
    %c0_i32 = arith.constant 0 : i32
    %c0_i32_0 = arith.constant 0 : i32
    return %c0_i32, %arg1 : i32, i32
  }
  func.func @transform_3(%arg0: i32, %arg1: i32) -> (i32, i32) {
    %c0_i32 = arith.constant 0 : i32
    return %arg0, %arg1 : i32, i32
  }
}

</mosaic_0001>

<bundles_post_ra>
// kernel: prepare_adjacency.1
= control target key start
LH: loop header
LB: loop body
LE: loop exit
PB: predicated region body
PF: predicated region fallthrough
CT: control target
= control target key end

     0   :  { %v370_v2 = vmov 0   ;;  %s514_s0 = inlined_call_operand.vmem [shape: f32[128,128], index: 0, kind: input, shape index: {}]   ;;  %s515_s1 = inlined_call_operand.vmem [shape: f32[128,1], index: 1, kind: input, shape index: {}]   ;;  %s516_s2 = inlined_call_operand.vmem [shape: f32[1,128], index: 2, kind: input, shape index: {}]   ;;  %s517_s3 = inlined_call_operand.hbm [shape: bf16[128,128], index: 3, kind: output, shape index: {}]  }
   0x1   :  { %v17_v0 = vld [vmem:[%s515_s1 + $0x10] sm:$0xff]  ;;  %v15_v1 = vld [vmem:[%s515_s1] sm:$0xff]  ;;  %347 = vset.pattern.permute.xlu1 %v370_v2  ;;  %346 = vset.pattern.permute.xlu0 %v370_v2  ;;  %v18_v3 = vld [vmem:[%s515_s1 + $0x18] sm:$0xff] }
   0x2   :  { %59 = vperm.xlu1 %347, %v17_v0   ;;  %49 = vperm.xlu0 %346, %v15_v1   ;;  %v16_v4 = vld [vmem:[%s515_s1 + $0x8] sm:$0xff]  ;;  %v19_v6 = vld [vmem:[%s515_s1 + $0x20] sm:$0xff] }
   0x3   :  { %v20_v5 = vld [vmem:[%s515_s1 + $0x28] sm:$0xff] }
   0x6   :  { %64 = vperm.xlu1 %347, %v18_v3   ;;  %54 = vperm.xlu0 %346, %v16_v4  }
   0x7   :  { %8 = vsyncpa [#allocation3], 0  ;;  %v22_v7 = vld [vmem:[%s515_s1 + $0x38] sm:$0xff]  ;;  %v21_v8 = vld [vmem:[%s515_s1 + $0x30] sm:$0xff]  ;;  %s371_s22 = smov [#allocation2]  }
   0x8   :  { %v24_v9 = vld [vmem:[%s515_s1 + $0x48] sm:$0xff]  ;;  %v23_v10 = vld [vmem:[%s515_s1 + $0x40] sm:$0xff]  ;;  %v26_v11 = vld [vmem:[%s515_s1 + $0x58] sm:$0xff]  ;;  %s251_s23 = sshll.u32 %s371_s22, 4  ;;  %s252_s23 = int_to_ptr.vmem [resolvable:$true] %s251_s23 }
   0x9   :  { %v25_v12 = vld [vmem:[%s515_s1 + $0x50] sm:$0xff]  ;;  %v28_v13 = vld [vmem:[%s515_s1 + $0x68] sm:$0xff]  ;;  %v27_v14 = vld [vmem:[%s515_s1 + $0x60] sm:$0xff]  ;;  %p353_p1 = scmp.lt.s32.totalorder %s252_s23, %s252_s23 }
   0xa   :  { %74 = vperm.xlu1 %347, %v20_v5   ;;  %69 = vperm.xlu0 %346, %v19_v6   ;;  %v30_v15 = vld [vmem:[%s515_s1 + $0x78] sm:$0xff]  ;;  %v29_v16 = vld [vmem:[%s515_s1 + $0x70] sm:$0xff]  ;;  %v31_v19 = vld [vmem:[%s514_s0] sm:$0xff] }
   0xb   :  { %v33_v17 = vld [vmem:[%s514_s0 + $0x10] sm:$0xff]  ;;  %v34_v21 = vld [vmem:[%s514_s0 + $0x18] sm:$0xff]  ;;  %v32_v22 = vld [vmem:[%s514_s0 + $0x8] sm:$0xff] }
   0xc   :  { %v457_v25 = vld [vmem:[%s516_s2] ss:$0 sm:$0xff]  ;;  %v36_v30 = vld [vmem:[%s514_s0 + $0x28] sm:$0xff]  ;;  %v38_v42 = vld [vmem:[%s514_s0 + $0x38] sm:$0xff] }
   0xd   :  { %v35_v31 = vld [vmem:[%s514_s0 + $0x20] sm:$0xff]  ;;  %v37_v43 = vld [vmem:[%s514_s0 + $0x30] sm:$0xff]  ;;  %v40_v51 = vld [vmem:[%s514_s0 + $0x48] sm:$0xff] }
   0xe   :  { %84 = vperm.xlu1 %347, %v22_v7   ;;  %79 = vperm.xlu0 %346, %v21_v8   ;;  %v39_v52 = vld [vmem:[%s514_s0 + $0x40] sm:$0xff]  ;;  %v42_v60 = vld [vmem:[%s514_s0 + $0x58] sm:$0xff]  ;;  %v41_v61 = vld [vmem:[%s514_s0 + $0x50] sm:$0xff] }
   0xf   :  { %v44_v5 = vld [vmem:[%s514_s0 + $0x68] sm:$0xff]  ;;  %v43_v6 = vld [vmem:[%s514_s0 + $0x60] sm:$0xff] }
  0x12   :  { %94 = vperm.xlu1 %347, %v24_v9   ;;  %89 = vperm.xlu0 %346, %v23_v10  }
  0x16   :  { %104 = vperm.xlu1 %347, %v26_v11   ;;  %99 = vperm.xlu0 %346, %v25_v12  }
  0x1a   :  { %114 = vperm.xlu1 %347, %v28_v13   ;;  %109 = vperm.xlu0 %346, %v27_v14   ;;  %v46_v14 = vld [vmem:[%s514_s0 + $0x78] sm:$0xff] }
  0x1e   :  { %124 = vperm.xlu1 %347, %v30_v15   ;;  %119 = vperm.xlu0 %346, %v29_v16   ;;  %v45_v15 = vld [vmem:[%s514_s0 + $0x70] sm:$0xff]  ;;  %s348_s0 = scalar_lea.vmem %s252_s23, 1024 }
  0x1f   :  { %p349_p0 = scmp.ne.s32.totalorder %s252_s23, %s348_s0  ;;  %p354_p2 = scmp.lt.s32.totalorder %s348_s0, %s348_s0 }
  0x21   :  { %p355_p3 = por %p354_p2, %p353_p1 }
  0x23   :  { %p356_p4 = pnand %p355_p3, %p349_p0 }
  0x7d   :  { %v60_v18 = vpop.permute.xlu1 %59  ;;  %v50_v20 = vpop.permute.xlu0 %49 }
  0x7e   :  { %v129_v23 = vmul.f32 %v60_v18, %v33_v17  ;;  %v127_v24 = vmul.f32 %v50_v20, %v31_v19 }
  0x80   :  { %v152_v32 = vmul.f32 %v457_v25, %v129_v23  ;;  %v150_v33 = vmul.f32 %v457_v25, %v127_v24 }
  0x81   :  { %v65_v26 = vpop.permute.xlu1 %64  ;;  %v55_v27 = vpop.permute.xlu0 %54 }
  0x82   :  { %v130_v28 = vmul.f32 %v65_v26, %v34_v21  ;;  %v128_v29 = vmul.f32 %v55_v27, %v32_v22 }
  0x84   :  { %v153_v34 = vmul.f32 %v457_v25, %v130_v28  ;;  %v151_v35 = vmul.f32 %v457_v25, %v128_v29 }
  0x85   :  { %v75_v36 = vpop.permute.xlu1 %74  ;;  %v70_v37 = vpop.permute.xlu0 %69 }
  0x86   :  { %v303_v38 = vpack.c.bf16 %v153_v34, %v152_v32  ;;  %v298_v39 = vpack.c.bf16 %v151_v35, %v150_v33  ;;  %v132_v40 = vmul.f32 %v75_v36, %v36_v30  ;;  %v131_v41 = vmul.f32 %v70_v37, %v35_v31 }
  0x88   :  { %335 = vst [vmem:[#allocation2 + $0x8] sm:$0xff] %v303_v38   ;;  %299 = vst [vmem:[#allocation2] sm:$0xff] %v298_v39   ;;  %v155_v44 = vmul.f32 %v457_v25, %v132_v40  ;;  %v154_v45 = vmul.f32 %v457_v25, %v131_v41 }
  0x89   :  { %v85_v46 = vpop.permute.xlu1 %84  ;;  %v80_v47 = vpop.permute.xlu0 %79 }
  0x8a   :  { %v308_v48 = vpack.c.bf16 %v155_v44, %v154_v45  ;;  %v134_v49 = vmul.f32 %v85_v46, %v38_v42  ;;  %v133_v50 = vmul.f32 %v80_v47, %v37_v43 }
  0x8c   :  { %336 = vst [vmem:[#allocation2 + $0x10] sm:$0xff] %v308_v48   ;;  %v157_v53 = vmul.f32 %v457_v25, %v134_v49  ;;  %v156_v54 = vmul.f32 %v457_v25, %v133_v50 }
  0x8d   :  { %v95_v55 = vpop.permute.xlu1 %94  ;;  %v90_v56 = vpop.permute.xlu0 %89 }
  0x8e   :  { %v313_v57 = vpack.c.bf16 %v157_v53, %v156_v54  ;;  %v136_v58 = vmul.f32 %v95_v55, %v40_v51  ;;  %v135_v59 = vmul.f32 %v90_v56, %v39_v52 }
  0x90   :  { %337 = vst [vmem:[#allocation2 + $0x18] sm:$0xff] %v313_v57   ;;  %v159_v62 = vmul.f32 %v457_v25, %v136_v58  ;;  %v158_v63 = vmul.f32 %v457_v25, %v135_v59 }
  0x91   :  { %v105_v0 = vpop.permute.xlu1 %104  ;;  %v100_v1 = vpop.permute.xlu0 %99 }
  0x92   :  { %v318_v2 = vpack.c.bf16 %v159_v62, %v158_v63  ;;  %v138_v3 = vmul.f32 %v105_v0, %v42_v60  ;;  %v137_v4 = vmul.f32 %v100_v1, %v41_v61 }
  0x94   :  { %338 = vst [vmem:[#allocation2 + $0x20] sm:$0xff] %v318_v2   ;;  %v161_v7 = vmul.f32 %v457_v25, %v138_v3  ;;  %v160_v8 = vmul.f32 %v457_v25, %v137_v4 }
  0x95   :  { %v115_v9 = vpop.permute.xlu1 %114  ;;  %v110_v10 = vpop.permute.xlu0 %109 }
  0x96   :  { %v323_v11 = vpack.c.bf16 %v161_v7, %v160_v8  ;;  %v140_v12 = vmul.f32 %v115_v9, %v44_v5  ;;  %v139_v13 = vmul.f32 %v110_v10, %v43_v6 }
  0x98   :  { %339 = vst [vmem:[#allocation2 + $0x28] sm:$0xff] %v323_v11   ;;  %v163_v16 = vmul.f32 %v457_v25, %v140_v12  ;;  %v162_v17 = vmul.f32 %v457_v25, %v139_v13 }
  0x99   :  { %v125_v18 = vpop.permute.xlu1 %124  ;;  %v120_v19 = vpop.permute.xlu0 %119 }
  0x9a   :  { %v328_v20 = vpack.c.bf16 %v163_v16, %v162_v17  ;;  %v142_v21 = vmul.f32 %v125_v18, %v46_v14  ;;  %v141_v22 = vmul.f32 %v120_v19, %v45_v15 }
  0x9c   :  { %340 = vst [vmem:[#allocation2 + $0x30] sm:$0xff] %v328_v20   ;;  %v165_v23 = vmul.f32 %v457_v25, %v142_v21  ;;  %v164_v24 = vmul.f32 %v457_v25, %v141_v22 }
  0x9e   :  { %v333_v26 = vpack.c.bf16 %v165_v23, %v164_v24 }
  0xa0   :  { %341 = vst [vmem:[#allocation2 + $0x38] sm:$0xff] %v333_v26  }
  0xa1   :  { %359 = shalt.err (!%p356_p4)
}
  0xa2   :  { %s372_s24 = smov 64   ;;  %s373_s1 = smov 4  }
  0xa3   :  { %257 = dma.vmem_to_hbm [thread:$0]  %s252_s23, 1024, %s517_s3, [#allocation3], %s372_s24, %s372_s24, %s373_s1  }
  0xa4   :  { %368 = dma.done.wait [#allocation3], 1024  }
  0xa5   :  { %369 = vsyncadd [#allocation3], 4294966272 }
  0xa6   :  { %261 = vsyncpa [#allocation3], 1 }

</bundles_post_ra>
